<compile_context>
chip_gen: v6e
topology: v6e:2x2x1
jax: 0.10.0
libtpu: 0.0.40
codegen_flags: <defaults>
</compile_context>

<pallas_src>
import functools

import jax
import jax.numpy as jnp
from jax.experimental import pallas as pl
from jax.experimental.pallas import tpu as pltpu


def _conv1x1_bn_relu_kernel(x_ref, w_ref, shift_ref, o_ref):
    # x_ref:     (Cin, T)    spatial tile of one image (T lanes of H*W)
    # w_ref:     (Cout, Cin) BN-scale-folded weight (grid-invariant)
    # shift_ref: (Cout, 1)   fused shift = (conv_bias - mean) * scale + beta
    # o_ref:     (Cout, T)
    y = jnp.dot(w_ref[...], x_ref[...], preferred_element_type=jnp.float32)
    y = y + shift_ref[...]
    o_ref[...] = jnp.maximum(y, 0.0).astype(o_ref.dtype)


@functools.partial(jax.jit, static_argnames=("eps", "tile_hw"))
def conv1x1_bn_relu(x_nchw, weight, bias, gamma, beta, running_mean,
                    running_var, eps=1e-5, tile_hw=1024):
    """x_nchw: (N, Cin, H, W); weight: (Cout, Cin); others: (Cout,)."""
    n, cin, h, w = x_nchw.shape
    cout = weight.shape[0]
    hw = h * w
    itemsize = jnp.dtype(x_nchw.dtype).itemsize

    # Fold BN (eval mode) + conv bias into the weight and a per-channel shift.
    # The fold is always done in float32.
    f32 = jnp.float32
    scale = gamma.astype(f32) / jnp.sqrt(running_var.astype(f32) + eps)
    w_fused = (weight.astype(f32) * scale[:, None]).astype(x_nchw.dtype)
    shift = ((bias.astype(f32) - running_mean.astype(f32)) * scale
             + beta.astype(f32)).reshape(cout, 1)

    # Spatial tiling: lane axis is H*W.  Pick the largest lane tile that is a
    # multiple of 128, <= tile_hw, and whose double-buffered input+output
    # tiles stay inside a conservative VMEM budget (portable to v7x's 64 MiB).
    act_budget = 24 << 20  # bytes for double-buffered activation+output tiles
    max_tile_by_vmem = max(128, act_budget // (2 * (cin + cout) * itemsize))
    hw_128 = pl.cdiv(hw, 128) * 128
    tile = max(128, (min(tile_hw, max_tile_by_vmem, hw_128) // 128) * 128)
    hw_pad = pl.cdiv(hw, tile) * tile

    x3 = x_nchw.reshape(n, cin, hw)
    if hw_pad != hw:
        x3 = jnp.pad(x3, ((0, 0), (0, 0), (0, hw_pad - hw)))

    grid = (n, hw_pad // tile)

    # Explicit VMEM limit: double-buffered activation/output tiles plus the
    # (double-buffered) weight and shift, with headroom; clamped below the
    # 64 MiB physical VMEM of a v7x TensorCore.
    vmem_est = (2 * (cin + cout) * tile * itemsize
                + 2 * cout * cin * itemsize + 2 * cout * itemsize)
    vmem_limit = int(min(max(2 * vmem_est, 16 << 20), 48 << 20))

    out3 = pl.pallas_call(
        _conv1x1_bn_relu_kernel,
        out_shape=jax.ShapeDtypeStruct((n, cout, hw_pad), x_nchw.dtype),
        grid_spec=pltpu.PrefetchScalarGridSpec(
            num_scalar_prefetch=0,
            grid=grid,
            in_specs=[
                pl.BlockSpec((None, cin, tile), lambda b, j: (b, 0, j)),
                # Weight and shift are grid-invariant (constant index_map), so
                # they are DMA'd into VMEM exactly once and stay resident.
                pl.BlockSpec((cout, cin), lambda b, j: (0, 0)),
                pl.BlockSpec((cout, 1), lambda b, j: (0, 0)),
            ],
            out_specs=pl.BlockSpec((None, cout, tile), lambda b, j: (b, 0, j)),
        ),
        compiler_params=pltpu.CompilerParams(
            dimension_semantics=("parallel", "parallel"),
            vmem_limit_bytes=vmem_limit),
    )(x3, w_fused, shift)

    # Drop spatial padding; reshape back to NCHW (free, no transpose).
    return out3[:, :, :hw].reshape(n, cout, h, w)


if __name__ == "__main__":
    N, CIN, COUT, H, W = 2, 4, 8, 16, 16

    key = jax.random.PRNGKey(0)
    kx, kw, kb, kg, kbeta, kmean, kvar = jax.random.split(key, 7)

    x = jax.random.normal(kx, (N, CIN, H, W), dtype=jnp.float32)

    # Deterministic synthetic parameters (Conv2d 1x1 + BatchNorm2d).
    weight = jax.random.normal(kw, (COUT, CIN), dtype=jnp.float32) * 0.1
    bias = jax.random.normal(kb, (COUT,), dtype=jnp.float32) * 0.1
    gamma = 1.0 + 0.1 * jax.random.normal(kg, (COUT,), dtype=jnp.float32)
    beta = 0.1 * jax.random.normal(kbeta, (COUT,), dtype=jnp.float32)
    running_mean = 0.1 * jax.random.normal(kmean, (COUT,), dtype=jnp.float32)
    running_var = jnp.abs(
        1.0 + 0.1 * jax.random.normal(kvar, (COUT,), dtype=jnp.float32))

    out = conv1x1_bn_relu(x, weight, bias, gamma, beta, running_mean,
                          running_var)
    out = jax.block_until_ready(out)

    # Cross-check against plain-JAX reference (conv1x1 -> BN(eval) -> ReLU).
    eps = 1e-5
    ref = jnp.einsum("nchw,oc->nohw", x, weight) + bias[None, :, None, None]
    ref = (ref - running_mean[None, :, None, None]) / jnp.sqrt(
        running_var[None, :, None, None] + eps)
    ref = ref * gamma[None, :, None, None] + beta[None, :, None, None]
    ref = jnp.maximum(ref, 0.0)
    assert out.shape == (N, COUT, H, W)
    assert jnp.allclose(out, ref, atol=1e-4, rtol=1e-4)

    print("KERNEL_OK")
</pallas_src>

<mosaic_0001>
module attributes {stable_mosaic.version = 11 : i64} {
  func.func @_conv1x1_bn_relu_kernel(%arg0: i32, %arg1: i32, %arg2: memref<1x4x256xf32, #tpu.memory_space<vmem>>, %arg3: memref<8x4xf32, #tpu.memory_space<vmem>>, %arg4: memref<8x1xf32, #tpu.memory_space<vmem>>, %arg5: memref<1x8x256xf32, #tpu.memory_space<vmem>>) attributes {dimension_semantics = [#tpu.dimension_semantics<parallel>, #tpu.dimension_semantics<parallel>], iteration_bounds = array<i64: 2, 1>, scalar_prefetch = 0 : i64, scratch_operands = 0 : i64, tpu.core_type = #tpu.core_type<tc>, window_params = [{transform_indices = @transform_0, window_bounds = array<i64: 1, 4, 256>}, {pipeline_mode = #tpu.pipeline_mode<synchronous>, transform_indices = @transform_1, window_bounds = array<i64: 8, 4>}, {pipeline_mode = #tpu.pipeline_mode<synchronous>, transform_indices = @transform_2, window_bounds = array<i64: 8, 1>}, {transform_indices = @transform_3, window_bounds = array<i64: 1, 8, 256>}]} {
    %c0 = arith.constant 0 : index
    %c0_0 = arith.constant 0 : index
    %0 = vector.load %arg3[%c0, %c0_0] : memref<8x4xf32, #tpu.memory_space<vmem>>, vector<8x4xf32>
    %c0_1 = arith.constant 0 : index
    %c0_2 = arith.constant 0 : index
    %c0_3 = arith.constant 0 : index
    %1 = vector.load %arg2[%c0_1, %c0_2, %c0_3] : memref<1x4x256xf32, #tpu.memory_space<vmem>>, vector<1x4x256xf32>
    %2 = vector.shape_cast %1 : vector<1x4x256xf32> to vector<4x256xf32>
    %cst = arith.constant dense<0.000000e+00> : vector<8x256xf32>
    %3 = tpu.matmul %0, %2, %cst {dimension_numbers = #tpu.dot_dimension_numbers<[1], [0], [0], [1], [0, 0, 1, 1], [], []>} : vector<8x4xf32>, vector<4x256xf32>, vector<8x256xf32> -> vector<8x256xf32>
    %c0_4 = arith.constant 0 : index
    %c0_5 = arith.constant 0 : index
    %4 = vector.load %arg4[%c0_4, %c0_5] : memref<8x1xf32, #tpu.memory_space<vmem>>, vector<8x1xf32>
    %5 = vector.broadcast %4 : vector<8x1xf32> to vector<8x256xf32>
    %6 = arith.addf %3, %5 : vector<8x256xf32>
    %cst_6 = arith.constant 0.000000e+00 : f32
    %7 = vector.broadcast %cst_6 : f32 to vector<8x256xf32>
    %8 = arith.maximumf %6, %7 : vector<8x256xf32>
    %c0_7 = arith.constant 0 : index
    %c0_8 = arith.constant 0 : index
    %c0_9 = arith.constant 0 : index
    %9 = vector.load %arg5[%c0_7, %c0_8, %c0_9] : memref<1x8x256xf32, #tpu.memory_space<vmem>>, vector<1x8x256xf32>
    %10 = vector.shape_cast %9 : vector<1x8x256xf32> to vector<8x256xf32>
    %11 = vector.shape_cast %8 : vector<8x256xf32> to vector<1x8x256xf32>
    tpu.vector_store %arg5[%c0_7, %c0_8, %c0_9], %11 {strides = array<i32>} : memref<1x8x256xf32, #tpu.memory_space<vmem>>, vector<1x8x256xf32>,
    return
  }
  func.func @transform_0(%arg0: i32, %arg1: i32) -> (i32, i32, i32) {
    %c0_i32 = arith.constant 0 : i32
    %c0_i32_0 = arith.constant 0 : i32
    return %arg0, %c0_i32, %arg1 : i32, i32, i32
  }
  func.func @transform_1(%arg0: i32, %arg1: i32) -> (i32, i32) {
    %c0_i32 = arith.constant 0 : i32
    %c0_i32_0 = arith.constant 0 : i32
    %c0_i32_1 = arith.constant 0 : i32
    return %c0_i32, %c0_i32_0 : i32, i32
  }
  func.func @transform_2(%arg0: i32, %arg1: i32) -> (i32, i32) {
    %c0_i32 = arith.constant 0 : i32
    %c0_i32_0 = arith.constant 0 : i32
    %c0_i32_1 = arith.constant 0 : i32
    return %c0_i32, %c0_i32_0 : i32, i32
  }
  func.func @transform_3(%arg0: i32, %arg1: i32) -> (i32, i32, i32) {
    %c0_i32 = arith.constant 0 : i32
    %c0_i32_0 = arith.constant 0 : i32
    return %arg0, %c0_i32, %arg1 : i32, i32, i32
  }
}

</mosaic_0001>

<bundles_post_ra>
// kernel: conv1x1_bn_relu.1
= control target key start
LH: loop header
LB: loop body
LE: loop exit
PB: predicated region body
PF: predicated region fallthrough
CT: control target
= control target key end

     0   :  { %s481_s12 = smov 0   ;;  %s483_s13 = smov 0   ;;  %s520_s0 = inlined_call_operand.vmem [shape: f32[2,4,256], index: 0, kind: input, shape index: {}]   ;;  %s521_s1 = inlined_call_operand.vmem [shape: f32[8,4], index: 1, kind: input, shape index: {}]   ;;  %s522_s2 = inlined_call_operand.vmem [shape: f32[8,1], index: 2, kind: input, shape index: {}]   ;;  %s523_s3 = inlined_call_operand.vmem [shape: f32[2,8,256], index: 3, kind: output, shape index: {}]  }
   0x1   :  { %s485_s14 = smov 0  }
   0x2 LB: > { %s25_s15 = sadd.s32 1, %s453_s13  ;;  %p395_p0 = scmp.ge.s32.totalorder %s457_s14, 1  ;;  %s457_s14 = sphi %s485_s14, %s13_s14   ;;  %s453_s13 = sphi %s483_s13, %s525_s13   ;;  %s449_s12 = sphi %s481_s12, %s524_s12  }
   0x3   : > { %p27_p1 = scmp.ge.s32.totalorder %s25_s15, 2  ;;  %p158_p2 = scmp.lt.s32.totalorder %s457_s14, 3 }
   0x5   : > { %s527_s15 = smov (%p27_p1, %s25_s15), 0  ;;  %p159_p3 = pnand %p395_p0, %p158_p2 }
   0x6   : > { %p191_p4 = scmp.lt.s32.totalorder (!%p159_p3), %s449_s12, 1 }
   0x7   : > { %162 = sbr.rel (%p159_p3) target bundleno = 220 (0xdc), region = 32 }
   0xc   : > { %v459_v0 = vmov 0.0   ;;  %v460_v1 = vmov 0   ;;  %v212_v2 = vld [vmem:[%s522_s2] sm:$0xff]  ;;  %s529_s12 = smov (!%p191_p4, %s449_s12), 1  ;;  %vm224_vm0 = vcmask 1043456   ;;  %vm220_vm1 = vcmask 31744  }
   0xd   : > { %293 = vmatprep.mubr.f32.mxu0 %v459_v0  ;;  %433 = vset.pattern.permute.xlu0 %v460_v1  ;;  %s405_s18 = sshll.u32 %s529_s12, 3  ;;  %v210_v5 = vld [vmem:[%s521_s1] sm:$0xff]  ;;  %s406_s24 = sshll.u32 %s529_s12, 4 }
   0xe   : > { %215 = vperm.xlu0 %433, %v212_v2   ;;  %s198_s21 = scalar_lea.vmem %s520_s0, %s405_s18  ;;  %s208_s27 = scalar_lea.vmem %s523_s3, %s406_s24 }
   0xf   : > { %v211_v3 = vld [vmem:[%s198_s21] sm:$0xff] }
  0x10   : > { %v219_v4 = vcombine.high %v211_v3, %v211_v3 }
  0x12   : > { %400 = vmatprep.subr.msk.mxu0 %vm224_vm0, %v219_v4 }
  0x13   : > { %401 = vmatpush1.msk.msra.mxu0 %vm224_vm0, %v211_v3 }
  0x14   : > { %402 = vmatmul.mubr.msk.f32.vlgmr.msra.gmra.mxu0 %vm220_vm1, %v210_v5 }
  0x89   : > { %v216_v6 = vpop.permute.xlu0 %215 }
  0xd4   : > { %v295_v7 = vpop.f32.mrf.mxu0 }
  0xd5   : > { %v296_v8 = vadd.f32 %v295_v7, %v216_v6 }
  0xd6   : > { %v297_v9 = vpop.f32.mrf.mxu0 }
  0xd7   : > { %v300_v10 = vmax.f32 %v296_v8, 0.0  ;;  %v298_v11 = vadd.f32 %v297_v9, %v216_v6 }
  0xd9   : > { %302 = vst [vmem:[%s208_s27] sm:$0xff] %v300_v10  ;;  %v301_v12 = vmax.f32 %v298_v11, 0.0 }
  0xdb   : > { %303 = vst [vmem:[%s208_s27 + $0x8] sm:$0xff] %v301_v12 }
  0xdc PF: > { %s13_s14 = sadd.s32 1, %s457_s14   ;;  %s524_s12 = smov %s453_s13 }
  0xdd   : > { %p10_p5 = scmp.ge.s32.totalorder %s13_s14, 4   ;;  %s525_s13 = smov %s527_s15 }
  0xdf   :  { %12 = sbr.rel (!%p10_p5) target bundleno = 2 (0x2), region = 62 }

</bundles_post_ra>
